<compile_context>
chip_gen: v7x
topology: tpu7x:2x2x1
jax: 0.10.0
libtpu: 0.0.40
codegen_flags: <defaults>
</compile_context>

<pallas_src>
import numpy as np
import jax
import jax.numpy as jnp
from jax.experimental import pallas as pl
from jax.experimental.pallas import tpu as pltpu


# ----------------------------- host-side helpers -----------------------------

def _adaptive_pool_matrix(side, size, offset, cut_size):
    """Row i averages input rows [offset+start_i, offset+end_i) of the crop."""
    m = np.zeros((cut_size, side), dtype=np.float32)
    for i in range(cut_size):
        start = (i * size) // cut_size
        end = -(((-(i + 1)) * size) // cut_size)  # ceil((i+1)*size/cut_size)
        m[i, offset + start: offset + end] = 1.0 / float(end - start)
    return m


def _choose_group(cutn, cs, lane_cap=1024, exclude_full=False):
    """Cutouts per grid step: prefer G*cs a multiple of 256, then 128, then large G."""
    best, best_key = None, None
    for g in range(1, cutn + 1):
        if cutn % g:
            continue
        if exclude_full and g == cutn:
            continue
        gl = g * cs
        if gl > lane_cap and g != 1:
            continue
        key = (gl % 256 == 0, gl % 128 == 0, g)
        if best_key is None or key > best_key:
            best, best_key = g, key
    return best


def _tn_divisors(N, cs):
    """Divisors of N usable as the N-tile (output-block sublane constraint)."""
    return [d for d in range(1, N + 1)
            if N % d == 0 and (d == N or (d * cs) % 8 == 0)]


def _choose_tn(N, cs, cap):
    divs = _tn_divisors(N, cs)
    under = [d for d in divs if d <= cap]
    return max(under) if under else min(divs)


# --------------------------------- kernel ------------------------------------

def _cutout_kernel(x_ref, wht_ref, wwt_ref, o_ref):
    # x_ref   : (tn, H, W)          input tile, compute dtype (e.g. bf16)
    # wht_ref : (G, H, cs)          per-cutout H-pooling matrices, pre-transposed
    # wwt_ref : (1, W, G*cs)        stacked, pre-transposed W-pooling matrices
    # o_ref   : (1, tn*cs, G*cs)    lane-stacked output: rows=(n, p), lanes=(g, o)
    tn, H, W = x_ref.shape
    G, _, cs = wht_ref.shape
    GL = G * cs

    # (1) W contraction as ONE large MXU matmul, f32 accumulation.
    x2 = x_ref[...].reshape(tn * H, W)
    t = jnp.dot(x2, wwt_ref[0], preferred_element_type=jnp.float32)   # (tn*H, G*cs)

    # (2) One XLU transpose, then one folded MXU matmul per cutout in the group.
    #     t stays f32; only the per-cutout slice is cast for the MXU.
    tT = jnp.swapaxes(t.reshape(tn, H, GL), 1, 2)                     # (tn, G*cs, H)
    parts = []
    for g in range(G):                                                # G small, static
        lhs = tT[:, g * cs:(g + 1) * cs, :].reshape(tn * cs, H)       # (tn*cs, H) f32
        og = jnp.dot(lhs.astype(x_ref.dtype), wht_ref[g],
                     preferred_element_type=jnp.float32)              # (tn*cs, cs)  [(n,p), o]
        parts.append(og)

    # (3) Single lane-stacked dense store: (tn*cs, G*cs), lanes ordered (g, o).
    res = parts[0] if G == 1 else jnp.concatenate(parts, axis=-1)
    o_ref[0] = res.astype(o_ref.dtype)


# --------------------------------- wrapper -----------------------------------

def make_cutouts(x, cut_size, cutn, cut_pow=1.0, seed=0,
                 compute_dtype=jnp.bfloat16, out_dtype=jnp.float32):
    """x: (B, C, H, W) float32.  Returns ((cutn*B, C, cut_size, cut_size), (wh, ww))."""
    B, C, H, W = x.shape
    sideY, sideX = H, W
    max_size = min(sideX, sideY)
    min_size = min(sideX, sideY, cut_size)
    cs = cut_size
    N = B * C

    # Deterministic "random" crop parameters (host-side glue, torch-equivalent
    # distribution but not the same RNG stream).
    rng = np.random.RandomState(seed)
    wh_list, ww_list = [], []
    for _ in range(cutn):
        size = int(rng.rand() ** cut_pow * (max_size - min_size) + min_size)
        size = max(size, 1)
        offsetx = int(rng.randint(0, sideX - size + 1))
        offsety = int(rng.randint(0, sideY - size + 1))
        wh_list.append(_adaptive_pool_matrix(sideY, size, offsety, cs))
        ww_list.append(_adaptive_pool_matrix(sideX, size, offsetx, cs))
    wh_f32 = np.stack(wh_list)                                  # (cutn, cs, H)
    ww_f32 = np.stack(ww_list)                                  # (cutn, cs, W)

    ic = jnp.dtype(compute_dtype).itemsize
    oc = jnp.dtype(out_dtype).itemsize

    # ---- generation-aware VMEM budget ---------------------------------------
    try:  # capability query only; never masks kernel compile errors
        vmem_cap = int(getattr(pltpu.get_tpu_info(), "vmem_capacity_bytes",
                               64 * 2 ** 20))
    except Exception:
        vmem_cap = 64 * 2 ** 20          # conservative default (v7x per-TC size)
    vmem_limit = int(min(0.85 * vmem_cap, 120 * 2 ** 20))
    tiling_budget = int(0.70 * vmem_cap)

    # ---- tiling plan: G cutouts per step, tn images per step -----------------
    def tn_for(G):
        GL = G * cs
        fixed = 2 * (G * H * cs + W * GL) * ic              # double-buffered wh / wwt
        per_tn = (3 * H * W * ic                            # x block (2 bufs) + loaded tile
                  + 2 * H * GL * 4                          # t (f32) + its transpose
                  + cs * H * (4 + ic)                       # per-g lhs slice (f32 + cast)
                  + 2 * cs * cs * 4                         # per-g matmul result
                  + cs * GL * 4                             # concatenated result (f32)
                  + 2 * cs * GL * oc)                       # double-buffered output block
        cap = max(1, (tiling_budget - fixed) // per_tn)
        return _choose_tn(N, cs, cap), cap

    G = _choose_group(cutn, cs)
    tn, tn_cap = tn_for(G)

    # Guarantee >= 2 grid steps on a "parallel" axis when possible (v7x: 2 TCs).
    if (N // tn) * (cutn // G) < 2:
        split = [d for d in _tn_divisors(N, cs) if d < N and d <= tn_cap]
        if split:
            tn = max(split)
        elif cutn > 1:
            g2 = _choose_group(cutn, cs, exclude_full=True)
            if g2 is not None:
                G = g2
                tn, tn_cap = tn_for(G)

    GL = G * cs
    num_groups = cutn // G
    num_n_tiles = N // tn

    # ---- host-side operand prep (stack + pre-transpose wh / ww) --------------
    wht = wh_f32.transpose(0, 2, 1)                              # (cutn, H, cs)
    wwt = (ww_f32.transpose(0, 2, 1)                             # (cutn, W, cs)
           .reshape(num_groups, G, W, cs)
           .transpose(0, 2, 1, 3)
           .reshape(num_groups, W, GL))                          # (num_groups, W, G*cs)
    wht_j = jnp.asarray(wht, dtype=compute_dtype)
    wwt_j = jnp.asarray(wwt, dtype=compute_dtype)
    x_flat = x.reshape(N, H, W).astype(compute_dtype)

    # ---- cost estimate (wh/wwt are re-fetched once per N-tile sweep) ---------
    flops = 2 * N * H * W * cutn * cs + 2 * N * H * cs * cs * cutn
    weight_fetches = num_n_tiles if num_groups > 1 else 1
    bytes_accessed = (N * H * W * ic
                      + weight_fetches * (cutn * H * cs + num_groups * W * GL) * ic
                      + num_groups * N * cs * GL * oc)

    out_raw = pl.pallas_call(
        _cutout_kernel,
        out_shape=jax.ShapeDtypeStruct((num_groups, N * cs, GL), out_dtype),
        grid_spec=pltpu.PrefetchScalarGridSpec(
            num_scalar_prefetch=0,
            grid=(num_n_tiles, num_groups),
            in_specs=[
                pl.BlockSpec((tn, H, W), lambda i, j: (i, 0, 0)),
                pl.BlockSpec((G, H, cs), lambda i, j: (j, 0, 0)),
                pl.BlockSpec((1, W, GL), lambda i, j: (j, 0, 0)),
            ],
            out_specs=pl.BlockSpec((1, tn * cs, GL), lambda i, j: (j, i, 0)),
        ),
        compiler_params=pltpu.CompilerParams(
            dimension_semantics=("parallel", "parallel"),
            vmem_limit_bytes=vmem_limit,
        ),
        cost_estimate=pl.CostEstimate(flops=int(flops), transcendentals=0,
                                      bytes_accessed=int(bytes_accessed)),
    )(x_flat, wht_j, wwt_j)

    # Lane-stacked (jg, n*cs + p, g*cs + o)  ->  (cutn*B, C, cs, cs).
    out5 = out_raw.reshape(num_groups, N, cs, G, cs)             # (jg, n, p, g, o)
    out = (jnp.transpose(out5, (0, 3, 1, 4, 2))                  # (jg, g, n, o, p)
           .reshape(cutn, B, C, cs, cs)
           .reshape(cutn * B, C, cs, cs))
    return out, (jnp.asarray(wh_f32), jnp.asarray(ww_f32))


# ------------------------------- reference -----------------------------------

def _reference(x, wh, ww, cut_size):
    # Pure-JAX f32 reference of the same pooling-matrix formulation.
    B, C, H, W = x.shape
    N = B * C
    cutn = wh.shape[0]
    xf = x.reshape(N, H, W).astype(jnp.float32)
    tmp = jnp.einsum("joh,nhw->jnow", wh, xf)
    out = jnp.einsum("jnow,jpw->jnop", tmp, ww)
    return out.reshape(cutn, B, C, cut_size, cut_size).reshape(
        cutn * B, C, cut_size, cut_size)


if __name__ == "__main__":
    B, C, H, W = 2, 4, 16, 16
    cut_size, cutn, cut_pow = 8, 4, 1.0

    key = jax.random.PRNGKey(0)
    x = jax.random.normal(key, (B, C, H, W), dtype=jnp.float32)

    out, (wh, ww) = make_cutouts(x, cut_size, cutn, cut_pow, seed=0)
    out = jax.block_until_ready(out)

    ref = _reference(x, wh, ww, cut_size)
    assert out.shape == (cutn * B, C, cut_size, cut_size), out.shape
    # bf16 MXU operands with f32 accumulation -> relaxed tolerance.
    np.testing.assert_allclose(np.asarray(out), np.asarray(ref),
                               rtol=2e-2, atol=2e-2)
    print("KERNEL_OK")
</pallas_src>

<mosaic_0001>
module attributes {stable_mosaic.version = 11 : i64} {
  func.func @_cutout_kernel(%arg0: i32, %arg1: i32, %arg2: memref<4x16x16xbf16, #tpu.memory_space<vmem>>, %arg3: memref<4x16x8xbf16, #tpu.memory_space<vmem>>, %arg4: memref<1x16x32xbf16, #tpu.memory_space<vmem>>, %arg5: memref<1x32x32xf32, #tpu.memory_space<vmem>>) attributes {dimension_semantics = [#tpu.dimension_semantics<parallel>, #tpu.dimension_semantics<parallel>], iteration_bounds = array<i64: 2, 1>, scalar_prefetch = 0 : i64, scratch_operands = 0 : i64, tpu.core_type = #tpu.core_type<tc>, window_params = [{transform_indices = @transform_0, window_bounds = array<i64: 4, 16, 16>}, {transform_indices = @transform_1, window_bounds = array<i64: 4, 16, 8>}, {transform_indices = @transform_2, window_bounds = array<i64: 1, 16, 32>}, {transform_indices = @transform_3, window_bounds = array<i64: 1, 32, 32>}]} {
    %c0 = arith.constant 0 : index
    %c0_0 = arith.constant 0 : index
    %c0_1 = arith.constant 0 : index
    %0 = vector.load %arg2[%c0, %c0_0, %c0_1] : memref<4x16x16xbf16, #tpu.memory_space<vmem>>, vector<4x16x16xbf16>
    %1 = vector.shape_cast %0 : vector<4x16x16xbf16> to vector<64x16xbf16>
    %c0_2 = arith.constant 0 : index
    %c0_3 = arith.constant 0 : index
    %c0_4 = arith.constant 0 : index
    %2 = vector.load %arg4[%c0_2, %c0_3, %c0_4] : memref<1x16x32xbf16, #tpu.memory_space<vmem>>, vector<1x16x32xbf16>
    %3 = vector.shape_cast %2 : vector<1x16x32xbf16> to vector<16x32xbf16>
    %cst = arith.constant dense<0.000000e+00> : vector<64x32xf32>
    %4 = tpu.matmul %1, %3, %cst {dimension_numbers = #tpu.dot_dimension_numbers<[1], [0], [0], [1], [0, 0, 1, 1], [], []>} : vector<64x16xbf16>, vector<16x32xbf16>, vector<64x32xf32> -> vector<64x32xf32>
    %5 = vector.shape_cast %4 : vector<64x32xf32> to vector<4x16x32xf32>
    %6 = tpu.transpose %5, [0, 2, 1] : vector<4x16x32xf32> -> vector<4x32x16xf32>
    %7 = vector.extract_strided_slice %6 {offsets = [0, 0, 0], sizes = [4, 8, 16], strides = [1, 1, 1]} : vector<4x32x16xf32> to vector<4x8x16xf32>
    %8 = vector.shape_cast %7 : vector<4x8x16xf32> to vector<32x16xf32>
    %9 = arith.truncf %8 : vector<32x16xf32> to vector<32x16xbf16>
    %c0_5 = arith.constant 0 : index
    %c0_6 = arith.constant 0 : index
    %c0_7 = arith.constant 0 : index
    %10 = vector.load %arg3[%c0_5, %c0_6, %c0_7] : memref<4x16x8xbf16, #tpu.memory_space<vmem>>, vector<1x16x8xbf16>
    %11 = vector.shape_cast %10 : vector<1x16x8xbf16> to vector<16x8xbf16>
    %cst_8 = arith.constant dense<0.000000e+00> : vector<32x8xf32>
    %12 = tpu.matmul %9, %11, %cst_8 {dimension_numbers = #tpu.dot_dimension_numbers<[1], [0], [0], [1], [0, 0, 1, 1], [], []>} : vector<32x16xbf16>, vector<16x8xbf16>, vector<32x8xf32> -> vector<32x8xf32>
    %13 = vector.extract_strided_slice %6 {offsets = [0, 8, 0], sizes = [4, 8, 16], strides = [1, 1, 1]} : vector<4x32x16xf32> to vector<4x8x16xf32>
    %14 = vector.shape_cast %13 : vector<4x8x16xf32> to vector<32x16xf32>
    %15 = arith.truncf %14 : vector<32x16xf32> to vector<32x16xbf16>
    %c1 = arith.constant 1 : index
    %c0_9 = arith.constant 0 : index
    %c0_10 = arith.constant 0 : index
    %16 = vector.load %arg3[%c1, %c0_9, %c0_10] : memref<4x16x8xbf16, #tpu.memory_space<vmem>>, vector<1x16x8xbf16>
    %17 = vector.shape_cast %16 : vector<1x16x8xbf16> to vector<16x8xbf16>
    %cst_11 = arith.constant dense<0.000000e+00> : vector<32x8xf32>
    %18 = tpu.matmul %15, %17, %cst_11 {dimension_numbers = #tpu.dot_dimension_numbers<[1], [0], [0], [1], [0, 0, 1, 1], [], []>} : vector<32x16xbf16>, vector<16x8xbf16>, vector<32x8xf32> -> vector<32x8xf32>
    %19 = vector.extract_strided_slice %6 {offsets = [0, 16, 0], sizes = [4, 8, 16], strides = [1, 1, 1]} : vector<4x32x16xf32> to vector<4x8x16xf32>
    %20 = vector.shape_cast %19 : vector<4x8x16xf32> to vector<32x16xf32>
    %21 = arith.truncf %20 : vector<32x16xf32> to vector<32x16xbf16>
    %c2 = arith.constant 2 : index
    %c0_12 = arith.constant 0 : index
    %c0_13 = arith.constant 0 : index
    %22 = vector.load %arg3[%c2, %c0_12, %c0_13] : memref<4x16x8xbf16, #tpu.memory_space<vmem>>, vector<1x16x8xbf16>
    %23 = vector.shape_cast %22 : vector<1x16x8xbf16> to vector<16x8xbf16>
    %cst_14 = arith.constant dense<0.000000e+00> : vector<32x8xf32>
    %24 = tpu.matmul %21, %23, %cst_14 {dimension_numbers = #tpu.dot_dimension_numbers<[1], [0], [0], [1], [0, 0, 1, 1], [], []>} : vector<32x16xbf16>, vector<16x8xbf16>, vector<32x8xf32> -> vector<32x8xf32>
    %25 = vector.extract_strided_slice %6 {offsets = [0, 24, 0], sizes = [4, 8, 16], strides = [1, 1, 1]} : vector<4x32x16xf32> to vector<4x8x16xf32>
    %26 = vector.shape_cast %25 : vector<4x8x16xf32> to vector<32x16xf32>
    %27 = arith.truncf %26 : vector<32x16xf32> to vector<32x16xbf16>
    %c3 = arith.constant 3 : index
    %c0_15 = arith.constant 0 : index
    %c0_16 = arith.constant 0 : index
    %28 = vector.load %arg3[%c3, %c0_15, %c0_16] : memref<4x16x8xbf16, #tpu.memory_space<vmem>>, vector<1x16x8xbf16>
    %29 = vector.shape_cast %28 : vector<1x16x8xbf16> to vector<16x8xbf16>
    %cst_17 = arith.constant dense<0.000000e+00> : vector<32x8xf32>
    %30 = tpu.matmul %27, %29, %cst_17 {dimension_numbers = #tpu.dot_dimension_numbers<[1], [0], [0], [1], [0, 0, 1, 1], [], []>} : vector<32x16xbf16>, vector<16x8xbf16>, vector<32x8xf32> -> vector<32x8xf32>
    %31 = tpu.concatenate %12, %18, %24, %30 in 1 : vector<32x8xf32>, vector<32x8xf32>, vector<32x8xf32>, vector<32x8xf32> -> vector<32x32xf32>
    %c0_18 = arith.constant 0 : index
    %c0_19 = arith.constant 0 : index
    %c0_20 = arith.constant 0 : index
    %32 = vector.load %arg5[%c0_18, %c0_19, %c0_20] : memref<1x32x32xf32, #tpu.memory_space<vmem>>, vector<1x32x32xf32>
    %33 = vector.shape_cast %32 : vector<1x32x32xf32> to vector<32x32xf32>
    %34 = vector.shape_cast %31 : vector<32x32xf32> to vector<1x32x32xf32>
    tpu.vector_store %arg5[%c0_18, %c0_19, %c0_20], %34 {strides = array<i32>} : memref<1x32x32xf32, #tpu.memory_space<vmem>>, vector<1x32x32xf32>,
    return
  }
  func.func @transform_0(%arg0: i32, %arg1: i32) -> (i32, i32, i32) {
    %c0_i32 = arith.constant 0 : i32
    %c0_i32_0 = arith.constant 0 : i32
    %c0_i32_1 = arith.constant 0 : i32
    return %arg0, %c0_i32, %c0_i32_0 : i32, i32, i32
  }
  func.func @transform_1(%arg0: i32, %arg1: i32) -> (i32, i32, i32) {
    %c0_i32 = arith.constant 0 : i32
    %c0_i32_0 = arith.constant 0 : i32
    %c0_i32_1 = arith.constant 0 : i32
    return %arg1, %c0_i32, %c0_i32_0 : i32, i32, i32
  }
  func.func @transform_2(%arg0: i32, %arg1: i32) -> (i32, i32, i32) {
    %c0_i32 = arith.constant 0 : i32
    %c0_i32_0 = arith.constant 0 : i32
    %c0_i32_1 = arith.constant 0 : i32
    return %arg1, %c0_i32, %c0_i32_0 : i32, i32, i32
  }
  func.func @transform_3(%arg0: i32, %arg1: i32) -> (i32, i32, i32) {
    %c0_i32 = arith.constant 0 : i32
    %c0_i32_0 = arith.constant 0 : i32
    return %arg1, %arg0, %c0_i32 : i32, i32, i32
  }
}

</mosaic_0001>

<bundles_post_ra>
// kernel: tpu_custom_call.1
= control target key start
LH: loop header
LB: loop body
LE: loop exit
PB: predicated region body
PF: predicated region fallthrough
CT: control target
= control target key end

     0   :  { %8 = vsyncpa [#allocation3], 0  ;;  %s1444_s0 = inlined_call_operand.hbm [shape: bf16[8,16,16], index: 0, kind: input, shape index: {}]   ;;  %s1445_s1 = inlined_call_operand.vmem [shape: bf16[4,16,8], index: 1, kind: input, shape index: {}]   ;;  %s1446_s2 = inlined_call_operand.vmem [shape: bf16[1,16,32], index: 2, kind: input, shape index: {}]   ;;  %s1447_s3 = inlined_call_operand.vmem [shape: f32[1,64,32], index: 3, kind: output, shape index: {}]  }
   0x1   :  { %10 = vsyncpa [#allocation3 + $0x1], 0  ;;  %s1278_s12 = smov 0   ;;  %s1280_s13 = smov 0  }
   0x2   :  { %s1282_s14 = smov 0   ;;  %s1284_s15 = smov 0  }
   0x3   :  { %s1286_s16 = smov 0   ;;  %s1288_s17 = smov 0  }
   0x4 LB: > { %s956_s18 = sadd.s32 4294967295, %s1250_s17   ;;  %s28_s19 = sadd.s32 1, %s1246_s16  ;;  %s1250_s17 = sphi %s1288_s17, %s16_s17   ;;  %s1246_s16 = sphi %s1286_s16, %s1455_s16   ;;  %s1242_s15 = sphi %s1284_s15, %s1454_s15   ;;  %s1238_s14 = sphi %s1282_s14, %s1453_s14   ;;  %s1234_s13 = sphi %s1280_s13, %s1452_s13   ;;  %s1230_s12 = sphi %s1278_s12, %s1451_s12  }
   0x5   : > { %p30_p0 = scmp.ge.s32.totalorder %s28_s19, 2  ;;  %s35_s20 = sadd.s32 1, %s1238_s14 }
   0x6   : > { %p42_p1 = scmp.ne.s32.totalorder %s1238_s14, %s1234_s13  ;;  %p43_p2 = scmp.eq.s32.totalorder %s1250_s17, 0 }
   0x7   : > { %s1457_s19 = smov (%p30_p0, %s28_s19), 0  ;;  %p48_p4 = scmp.ne.s32.totalorder %s1234_s13, %s1230_s12 }
   0x8   : > { %p1314_p3 = por %p43_p2, %p42_p1  ;;  %s32_s22 = ssub.s32 %s1246_s16, %s1457_s19 }
   0x9   : > { %p49_p5 = scmp.eq.s32.totalorder %s956_s18, 0  ;;  %p33_p6 = scmp.eq.s32.totalorder %s32_s22, 0 }
   0xa   : > { %p1058_p8 = scmp.lt.s32.totalorder %s1250_s17, 2  ;;  %s170_s25 = sand.u32 1, %s1238_s14  }
   0xb   : > { %p1321_p7 = por %p49_p5, %p48_p4  ;;  %s1000_s26 = sshll.u32 %s1246_s16, 9 }
   0xc   : > { %s1327_s24 = scalar_select %p33_p6, %s1238_s14, %s35_s20  }
   0xd   : > { %s962_s27 = sshll.u32 %s170_s25, 5  ;;  %s1334_s30 = scalar_lea.hbm %s1444_s0, %s1000_s26 }
   0xe   : > { %s174_s4 = scalar_lea.vmem [#allocation2], %s962_s27  ;;  %p1338_p9 = pnand %p1058_p8, %p1314_p3 }
   0xf   : > { %s182_s5 = sshll.u32 %s174_s4, 4  ;;  %s1344_s7 = scalar_lea.sflag [#allocation3], %s170_s25  ;;  %s1342_s5 = int_to_ptr.vmem [resolvable:$true] %s182_s5 }
  0x10   : > { %s1170_s8 = scalar_lea.hbm %s1334_s30, 512  ;;  %p1172_p11 = pneg %p1338_p9 }
  0x11   : > { %p1171_p10 = scmp.ne.s32.totalorder %s1334_s30, %s1170_s8  ;;  %s1175_s11 = scalar_lea.hbm %s1444_s0, 1024 }
  0x12   : > { %p1176_p0 = scmp.lt.u32.totalorder %s1334_s30, %s1444_s0  ;;  %p1177_p1 = scmp.lt.u32.totalorder %s1175_s11, %s1170_s8 }
  0x13   : > { %p1173_p12 = pnand %p1172_p11, %p1171_p10  ;;  %p1179_p3 = scmp.lt.u32.totalorder %s1170_s8, %s1334_s30 }
  0x14   : > { %p1178_p2 = por %p1177_p1, %p1176_p0 }
  0x15   : > { %p1174_p13 = pneg %p1173_p12 }
  0x16   : > { %p1180_p4 = por %p1179_p3, %p1178_p2 }
  0x18   : > { %p1181_p5 = pnand %p1180_p4, %p1174_p13 }
  0x1a   : > { %1184 = shalt.err (!%p1181_p5)
}
  0x1b   : > { %s1185_s20 = scalar_lea.vmem %s1342_s5, 512  ;;  %s1252_s21 = smov [#allocation2]  }
  0x1c   : > { %p1186_p6 = scmp.ne.s32.totalorder %s1342_s5, %s1185_s20  ;;  %s1190_s22 = sshll.u32 %s1252_s21, 4  ;;  %s1191_s22 = int_to_ptr.vmem [resolvable:$false] %s1190_s22 }
  0x1d   : > { %s1192_s25 = scalar_lea.vmem %s1191_s22, 1024  ;;  %p1193_p12 = scmp.lt.s32.totalorder %s1342_s5, %s1191_s22 }
  0x1e   : > { %p1188_p8 = pnand %p1186_p6, %p1172_p11  ;;  %p1194_p0 = scmp.lt.s32.totalorder %s1192_s25, %s1185_s20 }
  0x20   : > { %p1189_p10 = pneg %p1188_p8  ;;  %p1195_p1 = por %p1194_p0, %p1193_p12 }
  0x22   : > { %p1196_p2 = pnand %p1195_p1, %p1189_p10 }
  0x24   : > { %1199 = shalt.err (!%p1196_p2)
}
  0x25   : > { %s1253_s26 = smov 64   ;;  %s1254_s27 = smov 4  }
  0x26   : > { %1057 = dma.hbm_to_vmem [thread:$0]  (!%p1338_p9), %s1334_s30, 512, %s1342_s5, %s1344_s7, %s1253_s26, %s1253_s26, %s1254_s27  }
  0x27   : > { %p966_p11 = scmp.ge.s32.totalorder %s1250_s17, 1  ;;  %p190_p13 = scmp.lt.s32.totalorder %s1250_s17, 3 }
  0x29   : > { %p191_p3 = pnand %p966_p11, %p190_p13 }
  0x2a   : > { %s196_s28 = sand.u32 (!%p191_p3), 1, %s1234_s13  }
  0x2b   : > { %194 = sbr.rel (%p191_p3) target bundleno = 773 (0x305), region = 32  ;;  %s967_s29 = sshll.u32 (!%p191_p3), %s196_s28, 5 }
  0x2c   : > { %s197_s4 = scalar_lea.sflag (!%p191_p3), [#allocation3], %s196_s28  ;;  %s200_s8 = scalar_lea.vmem (!%p191_p3), [#allocation2], %s967_s29 }
  0x32   : > { %1225 = dma.done.wait (%p1321_p7), %s197_s4, 512  }
  0x33   : > { %1227 = vsyncadd (%p1321_p7), %s197_s4, 4294966784  ;;  %v1161_v0 = vld [vmem:[%s1446_s2] sm:$0xff]   ;;  %vm298_vm0 = vcmask 130048   ;;  %v1163_v2 = vld [vmem:[%s200_s8 + $0x8] sm:$0xff]   ;;  %s1255_s20 = smov 16   ;;  %s1256_s21 = smov 8  }
  0x34   : > { %v1162_v1 = vld [vmem:[%s200_s8] sm:$0xff]   ;;  %1018 = vmatprep.subr.bf16.mxu0 %v1161_v0  ;;  %v1164_v3 = vld [vmem:[%s200_s8 + $0x10] sm:$0xff]   ;;  %v1165_v4 = vld [vmem:[%s200_s8 + $0x18] sm:$0xff]   ;;  %s1257_s22 = smov 24   ;;  %s968_s25 = sshll.u32 %s1242_s15, 2  ;;  %vm815_vm1 = vcmask 64512  }
  0x35   : > { %1019 = vmatpush3.bf16.msra.mxu0 %v1161_v0  ;;  %1020 = vmatprep.mubr.msk.bf16.mxu0 %vm298_vm0, %v1162_v1  ;;  %v1166_v5 = vld [vmem:[%s1445_s1 + $0x10] sm:$0xff]   ;;  %v1167_v12 = vld [vmem:[%s1445_s1] sm:$0xff]   ;;  %v1168_v19 = vld [vmem:[%s1445_s1 + $0x8] sm:$0xff]   ;;  %p254_p7 = scmp.lt.s32.totalorder %s968_s25, 7  ;;  %vm824_vm2 = vcmask 195584   ;;  %vm829_vm3 = vcmask 261120  }
  0x36   : > { %1040 = vmatprep.subr.bf16.mxu0 %v1166_v5  ;;  %1028 = vmatprep.subr.bf16.mxu1 %v1167_v12  ;;  %v1169_v35 = vld [vmem:[%s1445_s1 + $0x18] sm:$0xff]  }
  0x37   : > { %1029 = vmatpush3.bf16.msra.mxu1 %v1167_v12  ;;  %s1459_s25 = smov (!%p254_p7, %s968_s25), 7 }
  0x38   : > { %1021 = vmatmul.mubr.msk.bf16.vlgmr.msra.gmra.mrb[0].mxu0 %vm298_vm0, %v1163_v2  ;;  %1034 = vmatprep.subr.bf16.mxu1 %v1168_v19  ;;  %s969_s26 = sshll.u32 %s1459_s25, 3 }
  0x39   : > { %1024 = vmatprep.mubr.msk.bf16.mxu0 %vm298_vm0, %v1164_v3  ;;  %1041 = vmatpush3.bf16.msra.mxu0 %v1166_v5  ;;  %s259_s29 = scalar_lea.vmem %s1447_s3, %s969_s26 }
  0x40   : > { %1025 = vmatmul.mubr.msk.bf16.gmra.mrb[4].mxu0 %vm298_vm0, %v1165_v4 }
 0x10b   : > { %v1022_v6 = vpop.f32.mrb[0].mxu0 }
 0x10c   : > { %v345_v7 = vpop.f32.mrb[1].mxu0 }
 0x10d   : > { %v1023_v8 = vpop.f32.mrb[2].mxu0  ;;  %v1113_v9 = vpack.i.bf16 %v1022_v6, %v345_v7 }
 0x10e   : > { %v348_v10 = vpop.f32.mrb[3].mxu0 }
 0x10f   : > { %v1115_v11 = vpack.i.bf16 %v1023_v8, %v348_v10  ;;  %1114 = vxpose.xlu0.b32.start [1/2] (short) (narrow) %v1113_v9, 32 }
 0x113   : > { %1116 = vxpose.xlu0.b32.end [2/2] (short) (narrow) %v1115_v11, 32  ;;  %v1026_v13 = vpop.f32.mrb[4].mxu0 }
 0x114   : > { %v361_v14 = vpop.f32.mrb[5].mxu0 }
 0x115   : > { %v1027_v15 = vpop.f32.mrb[6].mxu0  ;;  %v1137_v16 = vpack.i.bf16 %v1026_v13, %v361_v14 }
 0x116   : > { %v364_v17 = vpop.f32.mrb[7].mxu0 }
 0x117   : > { %v1139_v18 = vpack.i.bf16 %v1027_v15, %v364_v17  ;;  %1138 = vxpose.xlu1.b32.start [1/2] (short) (narrow) %v1137_v16, 32 }
 0x11b   : > { %1140 = vxpose.xlu1.b32.end [2/2] (short) (narrow) %v1139_v18, 32 }
 0x18f   : > { %v1117_v20 = vpop.trf.xlu0 }
 0x190   : > { %v1121_v21 = vunpack.i.h.bf16 %v1117_v20  ;;  %v1118_v22 = vunpack.i.l.bf16 %v1117_v20 }
 0x192   : > { %v504_v23 = vpack.c.bf16 %v1121_v21, %v1118_v22 }
 0x193   : > { %v1122_v24 = vpop.trf.xlu0 }
 0x194   : > { %v1126_v25 = vunpack.i.h.bf16 %v1122_v24  ;;  %v1123_v26 = vunpack.i.l.bf16 %v1122_v24  ;;  %1030 = vmatprep.mubr.msk.bf16.mxu1 %vm298_vm0, %v504_v23 }
 0x196   : > { %v569_v29 = vpack.c.bf16 %v1126_v25, %v1123_v26 }
 0x197   : > { %v1141_v27 = vpop.trf.xlu1  ;;  %v1127_v28 = vpop.trf.xlu0 }
 0x198   : > { %v1145_v30 = vunpack.i.h.bf16 %v1141_v27  ;;  %v1142_v31 = vunpack.i.l.bf16 %v1141_v27  ;;  %v1131_v32 = vunpack.i.h.bf16 %v1127_v28  ;;  %v1128_v33 = vunpack.i.l.bf16 %v1127_v28 }
 0x19a   : > { %v505_v34 = vpack.c.bf16 %v1145_v30, %v1142_v31  ;;  %v635_v37 = vpack.c.bf16 %v1131_v32, %v1128_v33 }
 0x19b   : > { %v1146_v36 = vpop.trf.xlu1  ;;  %v1132_v38 = vpop.trf.xlu0 }
 0x19c   : > { %v1150_v39 = vunpack.i.h.bf16 %v1146_v36  ;;  %v1147_v40 = vunpack.i.l.bf16 %v1146_v36  ;;  %1031 = vmatmul.mubr.msk.bf16.vlgmr.msra.gmra.mrb[0].mxu1 %vm298_vm0, %v505_v34  ;;  %v1136_v41 = vunpack.i.h.bf16 %v1132_v38  ;;  %v1133_v42 = vunpack.i.l.bf16 %v1132_v38  ;;  %1042 = vmatprep.mubr.msk.bf16.mxu0 %vm298_vm0, %v635_v37 }
 0x19d   : > { %1035 = vmatpush3.bf16.msra.mxu1 %v1168_v19  ;;  %1036 = vmatprep.mubr.msk.bf16.mxu1 %vm298_vm0, %v569_v29 }
 0x19e   : > { %1046 = vmatprep.subr.bf16.mxu1 %v1169_v35  ;;  %v570_v43 = vpack.c.bf16 %v1150_v39, %v1147_v40  ;;  %v701_v47 = vpack.c.bf16 %v1136_v41, %v1133_v42 }
 0x19f   : > { %v1151_v44 = vpop.trf.xlu1 }
 0x1a0   : > { %v1155_v45 = vunpack.i.h.bf16 %v1151_v44  ;;  %v1152_v46 = vunpack.i.l.bf16 %v1151_v44 }
 0x1a2   : > { %v636_v48 = vpack.c.bf16 %v1155_v45, %v1152_v46 }
 0x1a3   : > { %v1156_v49 = vpop.trf.xlu1 }
 0x1a4   : > { %1037 = vmatmul.mubr.msk.bf16.vlgmr.msra.gmra.mrb[4].mxu1 %vm298_vm0, %v570_v43  ;;  %1043 = vmatmul.mubr.msk.bf16.vlgmr.msra.gmra.mrb[8].mxu0 %vm298_vm0, %v636_v48  ;;  %v1160_v50 = vunpack.i.h.bf16 %v1156_v49  ;;  %v1157_v51 = vunpack.i.l.bf16 %v1156_v49 }
 0x1a5   : > { %1047 = vmatpush3.bf16.msra.mxu1 %v1169_v35  ;;  %1048 = vmatprep.mubr.msk.bf16.mxu1 %vm298_vm0, %v701_v47 }
 0x1a6   : > { %v702_v52 = vpack.c.bf16 %v1160_v50, %v1157_v51 }
 0x1ac   : > { %1049 = vmatmul.mubr.msk.bf16.vlgmr.msra.gmra.mrb[8].mxu1 %vm298_vm0, %v702_v52 }
 0x26f   : > { %v1032_v53 = vpop.f32.mrb[0].mxu1 }
 0x270   : > { %v554_v54 = vpop.f32.mrb[1].mxu1 }
 0x271   : > { %v1033_v55 = vpop.f32.mrb[2].mxu1 }
 0x272   : > { %v557_v56 = vpop.f32.mrb[3].mxu1 }
 0x277   : > { %v1038_v57 = vpop.f32.mrb[4].mxu1  ;;  %v1044_v58 = vpop.f32.mrb[8].mxu0 }
 0x278   : > { %791 = vrot.lane.b32.xlu0 %v1044_v58, %s1255_s20  ;;  %v686_v59 = vpop.f32.mrb[9].mxu0  ;;  %775 = vrot.lane.b32.xlu1 %v1038_v57, %s1256_s21  ;;  %v620_v60 = vpop.f32.mrb[5].mxu1 }
 0x279   : > { %v1039_v61 = vpop.f32.mrb[6].mxu1  ;;  %v1045_v62 = vpop.f32.mrb[10].mxu0 }
 0x27a   : > { %v623_v63 = vpop.f32.mrb[7].mxu1  ;;  %v689_v0 = vpop.f32.mrb[11].mxu0 }
 0x27c   : > { %787 = vrot.lane.b32.xlu1 %v686_v59, %s1255_s20  ;;  %771 = vrot.lane.b32.xlu0 %v620_v60, %s1256_s21 }
 0x27f   : > { %v1050_v1 = vpop.f32.mrb[8].mxu1 }
 0x280   : > { %793 = vrot.lane.b32.xlu0 %v1045_v62, %s1255_s20  ;;  %777 = vrot.lane.b32.xlu1 %v1039_v61, %s1256_s21  ;;  %v752_v2 = vpop.f32.mrb[9].mxu1 }
 0x281   : > { %v1051_v3 = vpop.f32.mrb[10].mxu1 }
 0x282   : > { %v755_v4 = vpop.f32.mrb[11].mxu1 }
 0x284   : > { %773 = vrot.lane.b32.xlu1 %v623_v63, %s1256_s21  ;;  %803 = vrot.lane.b32.xlu0 %v752_v2, %s1257_s22 }
 0x288   : > { %789 = vrot.lane.b32.xlu1 %v689_v0, %s1255_s20  ;;  %809 = vrot.lane.b32.xlu0 %v1051_v3, %s1257_s22 }
 0x28c   : > { %805 = vrot.lane.b32.xlu1 %v755_v4, %s1257_s22 }
 0x290   : > { %807 = vrot.lane.b32.xlu1 %v1050_v1, %s1257_s22 }
 0x2ea   : > { %v792_v5 = vpop.permute.xlu0 %791  ;;  %v776_v6 = vpop.permute.xlu1 %775 }
 0x2eb   : > { %v818_v20 = vsel %vm815_vm1, %v1032_v53, %v776_v6 }
 0x2ec   : > { %v822_v24 = vsel %vm298_vm0, %v818_v20, %v792_v5 }
 0x2ee   : > { %v788_v7 = vpop.permute.xlu1 %787  ;;  %v772_v8 = vpop.permute.xlu0 %771 }
 0x2ef   : > { %v816_v11 = vsel %vm815_vm1, %v554_v54, %v772_v8 }
 0x2f0   : > { %v820_v13 = vsel %vm298_vm0, %v816_v11, %v788_v7 }
 0x2f2   : > { %v794_v9 = vpop.permute.xlu0 %793  ;;  %v778_v10 = vpop.permute.xlu1 %777 }
 0x2f3   : > { %v819_v22 = vsel %vm815_vm1, %v1033_v55, %v778_v10 }
 0x2f4   : > { %v823_v26 = vsel %vm298_vm0, %v819_v22, %v794_v9 }
 0x2f6   : > { %v774_v12 = vpop.permute.xlu1 %773  ;;  %v804_v14 = vpop.permute.xlu0 %803 }
 0x2f7   : > { %v825_v15 = vsel %vm824_vm2, %v820_v13, %v804_v14  ;;  %v817_v17 = vsel %vm815_vm1, %v557_v56, %v774_v12 }
 0x2f8   : > { %830 = vst.msk [vmem:[%s259_s29] sm:$0xff] %vm829_vm3, %v825_v15 }
 0x2fa   : > { %v790_v16 = vpop.permute.xlu1 %789  ;;  %v810_v23 = vpop.permute.xlu0 %809 }
 0x2fb   : > { %v821_v18 = vsel %vm298_vm0, %v817_v17, %v790_v16  ;;  %v828_v28 = vsel %vm824_vm2, %v823_v26, %v810_v23 }
 0x2fc   : > { %833 = vst.msk [vmem:[%s259_s29 + $0x18] sm:$0xff] %vm829_vm3, %v828_v28 }
 0x2fe   : > { %v806_v19 = vpop.permute.xlu1 %805 }
 0x2ff   : > { %v826_v21 = vsel %vm824_vm2, %v821_v18, %v806_v19 }
 0x300   : > { %831 = vst.msk [vmem:[%s259_s29 + $0x8] sm:$0xff] %vm829_vm3, %v826_v21 }
 0x302   : > { %v808_v25 = vpop.permute.xlu1 %807 }
 0x303   : > { %v827_v27 = vsel %vm824_vm2, %v822_v24, %v808_v25 }
 0x304   : > { %832 = vst.msk [vmem:[%s259_s29 + $0x10] sm:$0xff] %vm829_vm3, %v827_v27 }
 0x305 PF: > { %s16_s17 = sadd.s32 1, %s1250_s17   ;;  %s1451_s12 = smov %s1234_s13 }
 0x306   : > { %p13_p9 = scmp.ge.s32.totalorder %s16_s17, 4   ;;  %s1452_s13 = smov %s1238_s14 }
 0x307   : > { %s1453_s14 = smov %s1327_s24  ;;  %s1454_s15 = smov %s1246_s16 }
 0x308   : > { %s1455_s16 = smov %s1457_s19  ;;  %15 = sbr.rel (!%p13_p9) target bundleno = 4 (0x4), region = 81 }
 0x30f   :  { %864 = vsyncpa [#allocation3], 1 }
 0x310   :  { %866 = vsyncpa [#allocation3 + $0x1], 1 }

</bundles_post_ra>
